<compile_context>
chip_gen: v7x
topology: tpu7x:2x2x1
jax: 0.10.0
libtpu: 0.0.40
codegen_flags: <defaults>
</compile_context>

<pallas_src>
import functools

import jax
import jax.numpy as jnp
from jax.experimental import pallas as pl
from jax.experimental.pallas import tpu as pltpu


def _round_up(x: int, m: int) -> int:
    return ((x + m - 1) // m) * m


def vs_kernel(x_ref, w_ref, t_ref, b_ref, o_ref, *, compute_dtype):
    # x_ref: (tm, D)  w_ref: (D, C)  t_ref/b_ref: (1, C) f32  o_ref: (tm, C)
    # Cast matmul operands in-kernel (hidden under DMA); accumulate in f32.
    x = x_ref[...].astype(compute_dtype)
    w = w_ref[...].astype(compute_dtype)
    logits = jnp.dot(x, w, preferred_element_type=jnp.float32)
    # f32 epilogue: per-class temperature / bias broadcast over the row dim.
    o_ref[...] = (logits * t_ref[...] + b_ref[...]).astype(o_ref.dtype)


def vs_forward(features, w, temperature, bias, *, tm=None, use_bf16=True,
               out_dtype=jnp.float32):
    """Fused backbone-linear + vector-scaling calibration.

    features:          [N, D]
    w:                 [D, C]   (stand-in for self.model)
    temperature, bias: [C]      (nn.Parameter, init = ones)
    returns:           [N, C]   == (features @ w) * temperature + bias
    """
    N, D = features.shape
    C = w.shape[1]

    # Row tile: large enough to amortize the ~0.35us/step grid overhead, but
    # capped so the row grid has >= 2 steps whenever possible (v7x megacore:
    # a 'parallel' axis with a single step pins all work to one TensorCore).
    if tm is None:
        tm = min(1024, _round_up(pl.cdiv(N, 2), 8))
    tm = max(8, _round_up(int(tm), 8))
    grid = (pl.cdiv(N, tm),)

    compute_dtype = jnp.bfloat16 if use_bf16 else jnp.float32

    # Per-class parameters as (1, C) f32 rows (tiny; DMA'd once, grid-invariant).
    t2 = temperature.astype(jnp.float32).reshape(1, C)
    b2 = bias.astype(jnp.float32).reshape(1, C)

    kernel = functools.partial(vs_kernel, compute_dtype=compute_dtype)

    # All last-dims (D, C, 1) are full array extents, so no (8,128) padding is
    # needed; the ragged last row block (N % tm != 0) is masked by Pallas.
    return pl.pallas_call(
        kernel,
        out_shape=jax.ShapeDtypeStruct((N, C), out_dtype),
        grid=grid,
        in_specs=[
            pl.BlockSpec((tm, D), lambda i: (i, 0)),    # features tile
            pl.BlockSpec((D, C), lambda i: (0, 0)),     # weights (grid-invariant)
            pl.BlockSpec((1, C), lambda i: (0, 0)),     # temperature
            pl.BlockSpec((1, C), lambda i: (0, 0)),     # bias
        ],
        out_specs=pl.BlockSpec((tm, C), lambda i: (i, 0)),
        compiler_params=pltpu.CompilerParams(
            dimension_semantics=("parallel",)),
    )(features, w, t2, b2)


if __name__ == "__main__":
    # Small synthetic problem: 203 nodes (deliberately NOT a multiple of the
    # tile size or of 8), 32 features, 8 classes.
    N, D, C = 203, 32, 8
    key = jax.random.PRNGKey(0)
    k_x, k_w = jax.random.split(key)

    features = jax.random.normal(k_x, (N, D), dtype=jnp.float32)
    w = jax.random.normal(k_w, (D, C), dtype=jnp.float32) * 0.1

    # nn.Parameter(torch.ones(num_classes)) for both temperature and bias.
    temperature = jnp.ones((C,), dtype=jnp.float32)
    bias = jnp.ones((C,), dtype=jnp.float32)

    # Pure-JAX references.
    ref_f32 = (features @ w) * temperature[None, :] + bias[None, :]
    ref_bf16 = (jnp.dot(features.astype(jnp.bfloat16), w.astype(jnp.bfloat16),
                        preferred_element_type=jnp.float32)
                * temperature[None, :] + bias[None, :])

    # 1) f32 compute path, default tm (2 grid steps, ragged last block).
    out_f32 = jax.block_until_ready(
        vs_forward(features, w, temperature, bias, use_bf16=False))
    assert out_f32.shape == (N, C) and out_f32.dtype == jnp.float32
    assert jnp.allclose(out_f32, ref_f32, atol=2e-5, rtol=2e-5), "f32 mismatch"

    # 2) default bf16-compute path (f32 accumulation + f32 epilogue/output).
    out_bf16 = jax.block_until_ready(vs_forward(features, w, temperature, bias))
    assert out_bf16.shape == (N, C)
    assert jnp.allclose(out_bf16, ref_bf16, atol=1e-4, rtol=1e-4), "bf16 mismatch"
    assert jnp.allclose(out_bf16, ref_f32, atol=5e-2, rtol=5e-2), "bf16 drift"

    # 3) multi-step grid (tm=64 -> cdiv(203,64)=4 steps, masked ragged edge).
    out_tiled = jax.block_until_ready(
        vs_forward(features, w, temperature, bias, tm=64, use_bf16=False))
    assert out_tiled.shape == (N, C)
    assert jnp.allclose(out_tiled, ref_f32, atol=2e-5, rtol=2e-5), "tiled mismatch"

    # 4) bf16 output stream (halves the dominant HBM store when acceptable).
    out_bf16_store = jax.block_until_ready(
        vs_forward(features, w, temperature, bias, out_dtype=jnp.bfloat16))
    assert out_bf16_store.shape == (N, C) and out_bf16_store.dtype == jnp.bfloat16
    assert jnp.allclose(out_bf16_store.astype(jnp.float32), ref_f32,
                        atol=6e-2, rtol=6e-2), "bf16-output drift"

    print("KERNEL_OK")
</pallas_src>

<mosaic_0001>
module attributes {stable_mosaic.version = 11 : i64} {
  func.func @vs_kernel(%arg0: i32, %arg1: memref<104x32xf32, #tpu.memory_space<vmem>>, %arg2: memref<32x8xf32, #tpu.memory_space<vmem>>, %arg3: memref<1x8xf32, #tpu.memory_space<vmem>>, %arg4: memref<1x8xf32, #tpu.memory_space<vmem>>, %arg5: memref<104x8xf32, #tpu.memory_space<vmem>>) attributes {dimension_semantics = [#tpu.dimension_semantics<parallel>], iteration_bounds = array<i64: 2>, scalar_prefetch = 0 : i64, scratch_operands = 0 : i64, tpu.core_type = #tpu.core_type<tc>, window_params = [{transform_indices = @transform_0, window_bounds = array<i64: 104, 32>}, {pipeline_mode = #tpu.pipeline_mode<synchronous>, transform_indices = @transform_1, window_bounds = array<i64: 32, 8>}, {pipeline_mode = #tpu.pipeline_mode<synchronous>, transform_indices = @transform_2, window_bounds = array<i64: 1, 8>}, {pipeline_mode = #tpu.pipeline_mode<synchronous>, transform_indices = @transform_3, window_bounds = array<i64: 1, 8>}, {transform_indices = @transform_4, window_bounds = array<i64: 104, 8>}]} {
    %c0 = arith.constant 0 : index
    %c0_0 = arith.constant 0 : index
    %0 = vector.load %arg1[%c0, %c0_0] : memref<104x32xf32, #tpu.memory_space<vmem>>, vector<104x32xf32>
    %c0_1 = arith.constant 0 : index
    %c0_2 = arith.constant 0 : index
    %1 = vector.load %arg2[%c0_1, %c0_2] : memref<32x8xf32, #tpu.memory_space<vmem>>, vector<32x8xf32>
    %cst = arith.constant dense<0.000000e+00> : vector<104x8xf32>
    %2 = tpu.matmul %0, %1, %cst {dimension_numbers = #tpu.dot_dimension_numbers<[1], [0], [0], [1], [0, 0, 1, 1], [], []>} : vector<104x32xf32>, vector<32x8xf32>, vector<104x8xf32> -> vector<104x8xf32>
    %c0_3 = arith.constant 0 : index
    %c0_4 = arith.constant 0 : index
    %3 = vector.load %arg3[%c0_3, %c0_4] : memref<1x8xf32, #tpu.memory_space<vmem>>, vector<1x8xf32>
    %4 = vector.broadcast %3 : vector<1x8xf32> to vector<104x8xf32>
    %5 = arith.mulf %2, %4 : vector<104x8xf32>
    %c0_5 = arith.constant 0 : index
    %c0_6 = arith.constant 0 : index
    %6 = vector.load %arg4[%c0_5, %c0_6] : memref<1x8xf32, #tpu.memory_space<vmem>>, vector<1x8xf32>
    %7 = vector.broadcast %6 : vector<1x8xf32> to vector<104x8xf32>
    %8 = arith.addf %5, %7 : vector<104x8xf32>
    %c0_7 = arith.constant 0 : index
    %c0_8 = arith.constant 0 : index
    %9 = vector.load %arg5[%c0_7, %c0_8] : memref<104x8xf32, #tpu.memory_space<vmem>>, vector<104x8xf32>
    tpu.vector_store %arg5[%c0_7, %c0_8], %8 {strides = array<i32>} : memref<104x8xf32, #tpu.memory_space<vmem>>, vector<104x8xf32>,
    return
  }
  func.func @transform_0(%arg0: i32) -> (i32, i32) {
    %c0_i32 = arith.constant 0 : i32
    %c0_i32_0 = arith.constant 0 : i32
    return %arg0, %c0_i32 : i32, i32
  }
  func.func @transform_1(%arg0: i32) -> (i32, i32) {
    %c0_i32 = arith.constant 0 : i32
    %c0_i32_0 = arith.constant 0 : i32
    %c0_i32_1 = arith.constant 0 : i32
    return %c0_i32, %c0_i32_0 : i32, i32
  }
  func.func @transform_2(%arg0: i32) -> (i32, i32) {
    %c0_i32 = arith.constant 0 : i32
    %c0_i32_0 = arith.constant 0 : i32
    %c0_i32_1 = arith.constant 0 : i32
    return %c0_i32, %c0_i32_0 : i32, i32
  }
  func.func @transform_3(%arg0: i32) -> (i32, i32) {
    %c0_i32 = arith.constant 0 : i32
    %c0_i32_0 = arith.constant 0 : i32
    %c0_i32_1 = arith.constant 0 : i32
    return %c0_i32, %c0_i32_0 : i32, i32
  }
  func.func @transform_4(%arg0: i32) -> (i32, i32) {
    %c0_i32 = arith.constant 0 : i32
    %c0_i32_0 = arith.constant 0 : i32
    return %arg0, %c0_i32 : i32, i32
  }
}

</mosaic_0001>

<bundles_post_ra>
// kernel: tpu_custom_call.1
= control target key start
LH: loop header
LB: loop body
LE: loop exit
PB: predicated region body
PF: predicated region fallthrough
CT: control target
= control target key end

     0   :  { %s643_s15 = smov 0   ;;  %s784_s0 = inlined_call_operand.vmem [shape: f32[203,32], index: 0, kind: input, shape index: {}]   ;;  %s785_s1 = inlined_call_operand.vmem [shape: f32[32,8], index: 1, kind: input, shape index: {}]   ;;  %s786_s2 = inlined_call_operand.vmem [shape: f32[1,8], index: 2, kind: input, shape index: {}]   ;;  %s787_s3 = inlined_call_operand.vmem [shape: f32[1,8], index: 3, kind: input, shape index: {}]   ;;  %s788_s4 = inlined_call_operand.vmem [shape: f32[203,8], index: 4, kind: output, shape index: {}]  }
   0x1 LB: > { %s498_s16 = sadd.s32 4294967295, %s613_s15   ;;  %p502_p0 = scmp.ge.s32.totalorder %s613_s15, 1  ;;  %s613_s15 = sphi %s643_s15, %s14_s15  }
   0x2   : > { %p163_p1 = scmp.lt.s32.totalorder %s613_s15, 3 }
   0x4   : > { %p164_p2 = pnand %p502_p0, %p163_p1 }
   0x5   : > { %v214_v0 = vld [vmem:[%s785_s1] sm:$0xff] (!%p164_p2)  ;;  %v215_v1 = vld [vmem:[%s785_s1 + $0x8] sm:$0xff] (!%p164_p2)  ;;  %v216_v2 = vld [vmem:[%s785_s1 + $0x10] sm:$0xff] (!%p164_p2)  ;;  %v615_v3 = vmov (!%p164_p2), 0.0|0.0   ;;  %s189_s25 = smul.u32 (!%p164_p2), 13, %s498_s16  ;;  %vm616_vm0 = vmmov (!%p164_p2), 0  }
   0x6   : > { %167 = sbr.rel (%p164_p2) target bundleno = 258 (0x102), region = 36  ;;  %586 = vmatprep.subr.bf16.mxu0 (!%p164_p2), %v615_v3  ;;  %v587_v4 = vpack.c.bf16 (!%p164_p2), %v215_v1, %v214_v0  ;;  %592 = vmatprep.subr.bf16.mxu1 (!%p164_p2), %v615_v3  ;;  %v217_v5 = vld [vmem:[%s785_s1 + $0x18] sm:$0xff] (!%p164_p2)  ;;  %v617_v6 = vmov (!%p164_p2), 0.0   ;;  %vm218_vm1 = vcmask (!%p164_p2), 261120   ;;  %v715_v21 = vld [vmem:[%s786_s2] ss:$0 sm:$0xff] (!%p164_p2) }
   0x7   : > { %547 = vmatprep.mubr.msk.f32.mxu0 (!%p164_p2), %vm616_vm0, %v617_v6  ;;  %568 = vmatprep.mubr.msk.f32.mxu1 (!%p164_p2), %vm616_vm0, %v617_v6  ;;  %v590_v7 = vpack.c.bf16 (!%p164_p2), %v217_v5, %v216_v2  ;;  %p190_p3 = scmp.lt.s32.totalorder (!%p164_p2), %s189_s25, 25  ;;  %v720_v23 = vld [vmem:[%s787_s3] ss:$0 sm:$0xff] (!%p164_p2)  ;;  %vm428_vm2 = vcmask (!%p164_p2), 64512  }
   0x8   : > { %588 = vmatpush3.bf16.msra.mxu0 (!%p164_p2), %v587_v4  ;;  %594 = vmatpush3.bf16.msra.mxu1 (!%p164_p2), %v587_v4 }
   0x9   : > { %589 = vmatprep.subr.bf16.mxu0 (!%p164_p2), %v615_v3  ;;  %593 = vmatprep.subr.bf16.mxu1 (!%p164_p2), %v615_v3 }
   0xc   : > { %591 = vmatpush3.bf16.msra.mxu0 (!%p164_p2), %v590_v7  ;;  %595 = vmatpush3.bf16.msra.mxu1 (!%p164_p2), %v590_v7 }
   0xd   : > { %s790_s25 = smov (!%p190_p3, %s189_s25), 25 }
   0xe   : > { %s503_s26 = sshll.u32 %s790_s25, 3 }
   0xf   : > { %s673_s29 = scalar_lea.vmem %s784_s0, %s503_s26  ;;  %s729_s10 = scalar_lea.vmem %s788_s4, %s503_s26 }
  0x10   : > { %v201_v8 = vld [vmem:[%s673_s29] sm:$0xff]  ;;  %v208_v9 = vld [vmem:[%s673_s29 + $0x38] sm:$0xff]  ;;  %v202_v10 = vld [vmem:[%s673_s29 + $0x8] sm:$0xff] }
  0x11   : > { %548 = vmatmul.mubr.msk.f32.vlgmr.msra.gmra.mrb[0].mxu0 %vm218_vm1, %v201_v8  ;;  %569 = vmatmul.mubr.msk.f32.vlgmr.msra.gmra.mrb[0].mxu1 %vm218_vm1, %v208_v9  ;;  %v209_v11 = vld [vmem:[%s673_s29 + $0x40] sm:$0xff]  ;;  %v203_v12 = vld [vmem:[%s673_s29 + $0x10] sm:$0xff]  ;;  %v210_v13 = vld [vmem:[%s673_s29 + $0x48] sm:$0xff] }
  0x12   : > { %550 = vmatprep.mubr.msk.f32.mxu0 %vm616_vm0, %v617_v6  ;;  %571 = vmatprep.mubr.msk.f32.mxu1 %vm616_vm0, %v617_v6  ;;  %v204_v14 = vld [vmem:[%s673_s29 + $0x18] sm:$0xff]  ;;  %v211_v15 = vld [vmem:[%s673_s29 + $0x50] sm:$0xff]  ;;  %v205_v16 = vld [vmem:[%s673_s29 + $0x20] sm:$0xff] }
  0x13   : > { %v212_v17 = vld [vmem:[%s673_s29 + $0x58] sm:$0xff]  ;;  %v206_v18 = vld [vmem:[%s673_s29 + $0x28] sm:$0xff]  ;;  %v213_v19 = vld [vmem:[%s673_s29 + $0x60] sm:$0xff] }
  0x14   : > { %v207_v20 = vld [vmem:[%s673_s29 + $0x30] sm:$0xff] }
  0x15   : > { %551 = vmatmul.mubr.msk.f32.gmra.mrb[2].mxu0 %vm218_vm1, %v202_v10  ;;  %572 = vmatmul.mubr.msk.f32.gmra.mrb[2].mxu1 %vm218_vm1, %v209_v11 }
  0x16   : > { %553 = vmatprep.mubr.msk.f32.mxu0 %vm616_vm0, %v617_v6  ;;  %574 = vmatprep.mubr.msk.f32.mxu1 %vm616_vm0, %v617_v6 }
  0x19   : > { %554 = vmatmul.mubr.msk.f32.gmra.mrb[4].mxu0 %vm218_vm1, %v203_v12  ;;  %575 = vmatmul.mubr.msk.f32.gmra.mrb[4].mxu1 %vm218_vm1, %v210_v13 }
  0x1a   : > { %556 = vmatprep.mubr.msk.f32.mxu0 %vm616_vm0, %v617_v6  ;;  %577 = vmatprep.mubr.msk.f32.mxu1 %vm616_vm0, %v617_v6 }
  0x1d   : > { %557 = vmatmul.mubr.msk.f32.gmra.mrb[6].mxu0 %vm218_vm1, %v204_v14  ;;  %578 = vmatmul.mubr.msk.f32.gmra.mrb[6].mxu1 %vm218_vm1, %v211_v15 }
  0x1e   : > { %559 = vmatprep.mubr.msk.f32.mxu0 %vm616_vm0, %v617_v6  ;;  %580 = vmatprep.mubr.msk.f32.mxu1 %vm616_vm0, %v617_v6 }
  0x21   : > { %560 = vmatmul.mubr.msk.f32.gmra.mrb[8].mxu0 %vm218_vm1, %v205_v16  ;;  %581 = vmatmul.mubr.msk.f32.gmra.mrb[8].mxu1 %vm218_vm1, %v212_v17 }
  0x22   : > { %562 = vmatprep.mubr.msk.f32.mxu0 %vm616_vm0, %v617_v6  ;;  %583 = vmatprep.mubr.msk.f32.mxu1 %vm616_vm0, %v617_v6 }
  0x25   : > { %563 = vmatmul.mubr.msk.f32.gmra.mrb[10].mxu0 %vm218_vm1, %v206_v18  ;;  %584 = vmatmul.mubr.msk.f32.gmra.mrb[10].mxu1 %vm218_vm1, %v213_v19 }
  0x26   : > { %565 = vmatprep.mubr.msk.f32.mxu0 %vm616_vm0, %v617_v6 }
  0x29   : > { %566 = vmatmul.mubr.msk.f32.gmra.mrb[12].mxu0 %vm218_vm1, %v207_v20 }
  0xe4   : > { %v324_v22 = vpop.f32.mrb[0].mxu0  ;;  %v359_v24 = vpop.f32.mrb[0].mxu1 }
  0xe5   : > { %v395_v25 = vmul.f32 %v715_v21, %v324_v22  ;;  %v549_v26 = vpop.f32.mrb[1].mxu0  ;;  %v402_v27 = vmul.f32 %v715_v21, %v359_v24  ;;  %v570_v28 = vpop.f32.mrb[1].mxu1 }
  0xe7   : > { %v415_v29 = vadd.f32 %v720_v23, %v395_v25  ;;  %v422_v30 = vadd.f32 %v720_v23, %v402_v27 }
  0xe8   : > { %v329_v31 = vpop.f32.mrb[2].mxu0  ;;  %v364_v32 = vpop.f32.mrb[2].mxu1 }
  0xe9   : > { %429 = vst.msk [vmem:[%s729_s10] sm:$0xff] %vm428_vm2, %v415_v29  ;;  %436 = vst.msk [vmem:[%s729_s10 + $0x38] sm:$0xff] %vm428_vm2, %v422_v30  ;;  %v396_v33 = vmul.f32 %v715_v21, %v329_v31  ;;  %v552_v34 = vpop.f32.mrb[3].mxu0  ;;  %v403_v35 = vmul.f32 %v715_v21, %v364_v32  ;;  %v573_v36 = vpop.f32.mrb[3].mxu1 }
  0xeb   : > { %v416_v37 = vadd.f32 %v720_v23, %v396_v33  ;;  %v423_v38 = vadd.f32 %v720_v23, %v403_v35 }
  0xec   : > { %v334_v39 = vpop.f32.mrb[4].mxu0  ;;  %v369_v40 = vpop.f32.mrb[4].mxu1 }
  0xed   : > { %430 = vst.msk [vmem:[%s729_s10 + $0x8] sm:$0xff] %vm428_vm2, %v416_v37  ;;  %437 = vst.msk [vmem:[%s729_s10 + $0x40] sm:$0xff] %vm428_vm2, %v423_v38  ;;  %v397_v41 = vmul.f32 %v715_v21, %v334_v39  ;;  %v555_v42 = vpop.f32.mrb[5].mxu0  ;;  %v404_v43 = vmul.f32 %v715_v21, %v369_v40  ;;  %v576_v44 = vpop.f32.mrb[5].mxu1 }
  0xef   : > { %v417_v45 = vadd.f32 %v720_v23, %v397_v41  ;;  %v424_v46 = vadd.f32 %v720_v23, %v404_v43 }
  0xf0   : > { %v339_v47 = vpop.f32.mrb[6].mxu0  ;;  %v374_v48 = vpop.f32.mrb[6].mxu1 }
  0xf1   : > { %431 = vst.msk [vmem:[%s729_s10 + $0x10] sm:$0xff] %vm428_vm2, %v417_v45  ;;  %438 = vst.msk [vmem:[%s729_s10 + $0x48] sm:$0xff] %vm428_vm2, %v424_v46  ;;  %v398_v49 = vmul.f32 %v715_v21, %v339_v47  ;;  %v558_v50 = vpop.f32.mrb[7].mxu0  ;;  %v405_v51 = vmul.f32 %v715_v21, %v374_v48  ;;  %v579_v52 = vpop.f32.mrb[7].mxu1 }
  0xf3   : > { %v418_v53 = vadd.f32 %v720_v23, %v398_v49  ;;  %v425_v54 = vadd.f32 %v720_v23, %v405_v51 }
  0xf4   : > { %v344_v55 = vpop.f32.mrb[8].mxu0  ;;  %v379_v56 = vpop.f32.mrb[8].mxu1 }
  0xf5   : > { %432 = vst.msk [vmem:[%s729_s10 + $0x18] sm:$0xff] %vm428_vm2, %v418_v53  ;;  %439 = vst.msk [vmem:[%s729_s10 + $0x50] sm:$0xff] %vm428_vm2, %v425_v54  ;;  %v399_v57 = vmul.f32 %v715_v21, %v344_v55  ;;  %v561_v58 = vpop.f32.mrb[9].mxu0  ;;  %v406_v59 = vmul.f32 %v715_v21, %v379_v56  ;;  %v582_v60 = vpop.f32.mrb[9].mxu1 }
  0xf7   : > { %v419_v61 = vadd.f32 %v720_v23, %v399_v57  ;;  %v426_v62 = vadd.f32 %v720_v23, %v406_v59 }
  0xf8   : > { %v349_v63 = vpop.f32.mrb[10].mxu0  ;;  %v384_v0 = vpop.f32.mrb[10].mxu1 }
  0xf9   : > { %433 = vst.msk [vmem:[%s729_s10 + $0x20] sm:$0xff] %vm428_vm2, %v419_v61  ;;  %440 = vst.msk [vmem:[%s729_s10 + $0x58] sm:$0xff] %vm428_vm2, %v426_v62  ;;  %v400_v1 = vmul.f32 %v715_v21, %v349_v63  ;;  %v564_v2 = vpop.f32.mrb[11].mxu0  ;;  %v407_v3 = vmul.f32 %v715_v21, %v384_v0  ;;  %v585_v4 = vpop.f32.mrb[11].mxu1 }
  0xfb   : > { %v420_v5 = vadd.f32 %v720_v23, %v400_v1  ;;  %v427_v6 = vadd.f32 %v720_v23, %v407_v3 }
  0xfc   : > { %v354_v7 = vpop.f32.mrb[12].mxu0 }
  0xfd   : > { %434 = vst.msk [vmem:[%s729_s10 + $0x28] sm:$0xff] %vm428_vm2, %v420_v5  ;;  %441 = vst.msk [vmem:[%s729_s10 + $0x60] sm:$0xff] %vm428_vm2, %v427_v6  ;;  %v401_v8 = vmul.f32 %v715_v21, %v354_v7  ;;  %v567_v9 = vpop.f32.mrb[13].mxu0 }
  0xff   : > { %v421_v10 = vadd.f32 %v720_v23, %v401_v8 }
 0x101   : > { %435 = vst.msk [vmem:[%s729_s10 + $0x30] sm:$0xff] %vm428_vm2, %v421_v10 }
 0x102 PF: > { %s14_s15 = sadd.s32 1, %s613_s15  }
 0x103   : > { %p11_p4 = scmp.ge.s32.totalorder %s14_s15, 4  }
 0x105   :  { %13 = sbr.rel (!%p11_p4) target bundleno = 1 (0x1), region = 66 }

</bundles_post_ra>
